<compile_context>
chip_gen: v7x
topology: tpu7x:2x2x1
jax: 0.10.0
libtpu: 0.0.40
codegen_flags: <defaults>
</compile_context>

<pallas_src>
import functools

import jax
import jax.numpy as jnp
from jax.experimental import pallas as pl
from jax.experimental.pallas import tpu as pltpu


# ------------------------------- kernels ------------------------------------


def _layernorm_kernel(x_ref, gamma_ref, beta_ref, o_ref, *, eps):
    """Plain path: one logical row per block row; XLU reduction over lanes."""
    x = x_ref[...].astype(jnp.float32)
    u = jnp.mean(x, axis=-1, keepdims=True)
    d = x - u
    s = jnp.mean(d * d, axis=-1, keepdims=True)          # two-pass variance
    x_norm = d * jax.lax.rsqrt(s + eps)
    o_ref[...] = (gamma_ref[...] * x_norm + beta_ref[...]).astype(o_ref.dtype)


def _layernorm_packed_kernel(x_ref, gamma_ref, beta_ref, seg_ref, o_ref, *,
                             eps, inv_dim):
    """Packed path (dim < 128, 128 % dim == 0).

    Each 128-lane row holds G = 128 // dim logical rows.  Per-segment sums
    are computed by multiplying with a block-diagonal ones matrix `seg` on
    the MXU, which simultaneously broadcasts the per-segment statistic back
    across that segment's lanes, keeping every VPU op and the store path
    lane-dense.
    """
    x = x_ref[...].astype(jnp.float32)
    seg = seg_ref[...]                         # (P, P) block-diagonal ones
    u = jnp.dot(x, seg, preferred_element_type=jnp.float32) * inv_dim
    d = x - u
    s = jnp.dot(d * d, seg, preferred_element_type=jnp.float32) * inv_dim
    x_norm = d * jax.lax.rsqrt(s + eps)
    o_ref[...] = (gamma_ref[...] * x_norm + beta_ref[...]).astype(o_ref.dtype)


# ---------------------------- tiling heuristics ------------------------------


def _sublane_multiple(dtype):
    itemsize = jnp.dtype(dtype).itemsize
    if itemsize >= 4:
        return 8
    if itemsize == 2:
        return 16
    return 32


def _round_up(x, m):
    return ((x + m - 1) // m) * m


def _tpu_vmem_capacity_bytes():
    try:
        return int(pltpu.get_tpu_info().vmem_capacity_bytes)
    except Exception:
        return 64 * 1024 * 1024     # conservative fallback: v7x physical VMEM


def _vmem_limit_bytes(vmem_capacity):
    # Leave ~16 MiB headroom for compiler-internal scratch; never request more
    # than 64 MiB of scoped VMEM (ample for this streaming kernel even on
    # v5e/v6e which have 128 MiB physical).  -> ~48 MiB on v7x, 64 MiB else.
    return max(16 * 1024 * 1024,
               min(vmem_capacity - 16 * 1024 * 1024, 64 * 1024 * 1024))


def _choose_row_tile(rows, dim, dtype, vmem_capacity, vmem_limit):
    """Pick a row tile: roofline-sized blocks, f32-temp-aware, >=2 grid steps."""
    itemsize = jnp.dtype(dtype).itemsize
    sub = _sublane_multiple(dtype)
    rows_rounded = _round_up(rows, sub)

    # Streaming block target.  v7x (only generation with <=64 MiB VMEM) has
    # ~3.2 TB/s HBM, so its roofline plateau sits at larger blocks: ~6 MiB of
    # input per block there, ~4 MiB on v5e/v6e.
    if vmem_capacity <= 64 * 1024 * 1024:
        target_block_bytes = 6 * 1024 * 1024
    else:
        target_block_bytes = 4 * 1024 * 1024
    rt = max(sub, target_block_bytes // max(1, dim * itemsize))

    # VMEM working set per step: double-buffered input + output blocks in the
    # I/O dtype (4 * itemsize bytes/elem) PLUS ~3 single-buffered f32
    # temporaries (upcast x, d, x_norm) kept live by the two-pass mean/var.
    bytes_per_row = dim * (4 * itemsize + 3 * 4)
    budget = max(2 * 1024 * 1024, (vmem_limit * 3) // 4)
    rt = min(rt, budget // max(1, bytes_per_row))

    # Keep at least a few grid steps so dimension_semantics=("parallel",) can
    # shard the 1-D grid across both v7x TensorCores; grid=(1,) would idle
    # half that chip's HBM bandwidth.  Harmless on single-TC v5e/v6e.
    max_blocks = pl.cdiv(rows_rounded, sub)
    target_blocks = min(4, max_blocks)
    rt = min(rt, _round_up(pl.cdiv(rows_rounded, target_blocks), sub))

    rt = max(sub, (rt // sub) * sub)
    return min(rt, rows_rounded)


# -------------------------------- wrapper ------------------------------------


def layer_norm(x, gamma, beta, *, variance_epsilon=1e-12, row_tile=None):
    """TF-style LayerNorm over the last axis of x.

    x:     (..., dim)
    gamma: (dim,)
    beta:  (dim,)
    """
    orig_shape = x.shape
    dim = orig_shape[-1]
    rows = 1
    for s in orig_shape[:-1]:
        rows *= s

    vmem_capacity = _tpu_vmem_capacity_bytes()
    vmem_limit = _vmem_limit_bytes(vmem_capacity)
    itemsize = jnp.dtype(x.dtype).itemsize

    # Hoist parameter casts out of the kernel body (compute dtype is f32).
    g_f32 = gamma.astype(jnp.float32)
    b_f32 = beta.astype(jnp.float32)

    # Lane packing applies when dim evenly divides 128 and rows divides by G.
    group = 0
    if dim < 128 and 128 % dim == 0:
        g_cand = 128 // dim
        if g_cand > 1 and rows % g_cand == 0:
            group = g_cand

    compiler_params = pltpu.CompilerParams(
        dimension_semantics=("parallel",),
        vmem_limit_bytes=vmem_limit,
    )

    if group:
        # ---------------- packed, lane-dense path ----------------
        dim_p = group * dim              # == 128
        rows_p = rows // group
        x2 = x.reshape(rows_p, dim_p)
        g2 = jnp.tile(g_f32, group).reshape(1, dim_p)
        b2 = jnp.tile(b_f32, group).reshape(1, dim_p)
        lane = jnp.arange(dim_p)
        seg = (lane[:, None] // dim == lane[None, :] // dim).astype(jnp.float32)

        rt = row_tile if row_tile is not None else _choose_row_tile(
            rows_p, dim_p, x.dtype, vmem_capacity, vmem_limit)
        grid = (pl.cdiv(rows_p, rt),)

        cost = pl.CostEstimate(
            flops=4 * rows_p * dim_p * dim_p + 6 * rows * dim,
            transcendentals=rows,
            bytes_accessed=2 * rows * dim * itemsize
            + (2 * dim_p + dim_p * dim_p) * 4,
        )
        kernel = functools.partial(
            _layernorm_packed_kernel, eps=variance_epsilon, inv_dim=1.0 / dim)

        out = pl.pallas_call(
            kernel,
            out_shape=jax.ShapeDtypeStruct((rows_p, dim_p), x.dtype),
            grid_spec=pltpu.PrefetchScalarGridSpec(
                num_scalar_prefetch=0,
                grid=grid,
                in_specs=[
                    pl.BlockSpec((rt, dim_p), lambda i: (i, 0)),
                    pl.BlockSpec((1, dim_p), lambda i: (0, 0)),
                    pl.BlockSpec((1, dim_p), lambda i: (0, 0)),
                    pl.BlockSpec((dim_p, dim_p), lambda i: (0, 0)),
                ],
                out_specs=pl.BlockSpec((rt, dim_p), lambda i: (i, 0)),
            ),
            compiler_params=compiler_params,
            cost_estimate=cost,
        )(x2, g2, b2, seg)
        return out.reshape(orig_shape)

    # -------------------- plain (unpacked) path --------------------
    x2 = x.reshape(rows, dim)
    g2 = g_f32.reshape(1, dim)
    b2 = b_f32.reshape(1, dim)

    rt = row_tile if row_tile is not None else _choose_row_tile(
        rows, dim, x.dtype, vmem_capacity, vmem_limit)
    grid = (pl.cdiv(rows, rt),)

    cost = pl.CostEstimate(
        flops=8 * rows * dim,
        transcendentals=rows,
        bytes_accessed=2 * rows * dim * itemsize + 2 * dim * 4,
    )
    kernel = functools.partial(_layernorm_kernel, eps=variance_epsilon)

    out = pl.pallas_call(
        kernel,
        out_shape=jax.ShapeDtypeStruct((rows, dim), x.dtype),
        grid_spec=pltpu.PrefetchScalarGridSpec(
            num_scalar_prefetch=0,
            grid=grid,
            in_specs=[
                pl.BlockSpec((rt, dim), lambda i: (i, 0)),
                pl.BlockSpec((1, dim), lambda i: (0, 0)),
                pl.BlockSpec((1, dim), lambda i: (0, 0)),
            ],
            out_specs=pl.BlockSpec((rt, dim), lambda i: (i, 0)),
        ),
        compiler_params=compiler_params,
        cost_estimate=cost,
    )(x2, g2, b2)
    return out.reshape(orig_shape)


def layer_norm_ref(x, gamma, beta, eps=1e-12):
    """Pure-JAX reference matching the PyTorch module."""
    u = jnp.mean(x, axis=-1, keepdims=True)
    s = jnp.mean((x - u) ** 2, axis=-1, keepdims=True)
    xn = (x - u) / jnp.sqrt(s + eps)
    return gamma * xn + beta


if __name__ == "__main__":
    key = jax.random.PRNGKey(0)
    k0, k1, k2, k3, k4 = jax.random.split(key, 5)

    # --- Primary test: module-like shapes, default params (ones / zeros) ----
    # hidden=32 -> packed lane-dense path (G = 4 rows per 128-lane row).
    batch, seq, hidden = 2, 8, 32
    gamma = jnp.ones((hidden,), dtype=jnp.float32)
    beta = jnp.zeros((hidden,), dtype=jnp.float32)
    x = jax.random.normal(k0, (batch, seq, hidden), dtype=jnp.float32)

    out = layer_norm(x, gamma, beta, variance_epsilon=1e-12)
    out = jax.block_until_ready(out)
    ref = layer_norm_ref(x, gamma, beta)
    assert out.shape == x.shape
    assert jnp.allclose(out, ref, atol=1e-5, rtol=1e-5), "mismatch vs reference"

    # --- Fallback path: rows (21) not divisible by G -> plain kernel,
    #     partial last block (tile 8). ---------------------------------------
    x2 = jax.random.normal(k1, (3, 7, hidden), dtype=jnp.float32)
    gamma2 = jax.random.normal(k2, (hidden,), dtype=jnp.float32)
    beta2 = jax.random.normal(k3, (hidden,), dtype=jnp.float32)
    out2 = layer_norm(x2, gamma2, beta2, variance_epsilon=1e-12, row_tile=8)
    out2 = jax.block_until_ready(out2)
    ref2 = layer_norm_ref(x2, gamma2, beta2)
    assert out2.shape == x2.shape
    assert jnp.allclose(out2, ref2, atol=1e-5, rtol=1e-5), "plain-path mismatch"

    # --- Packed path with multiple grid steps (rows=64 -> 16 packed rows,
    #     tile 8 -> grid of 2). ----------------------------------------------
    x3 = jax.random.normal(k4, (4, 16, hidden), dtype=jnp.float32)
    out3 = layer_norm(x3, gamma2, beta2, variance_epsilon=1e-12, row_tile=8)
    out3 = jax.block_until_ready(out3)
    ref3 = layer_norm_ref(x3, gamma2, beta2)
    assert out3.shape == x3.shape
    assert jnp.allclose(out3, ref3, atol=1e-5, rtol=1e-5), "packed-path mismatch"

    print("KERNEL_OK")
</pallas_src>

<mosaic_0001>
module attributes {stable_mosaic.version = 11 : i64} {
  func.func @_layernorm_packed_kernel(%arg0: i32, %arg1: memref<8x128xf32, #tpu.memory_space<vmem>>, %arg2: memref<1x128xf32, #tpu.memory_space<vmem>>, %arg3: memref<1x128xf32, #tpu.memory_space<vmem>>, %arg4: memref<128x128xf32, #tpu.memory_space<vmem>>, %arg5: memref<8x128xf32, #tpu.memory_space<vmem>>) attributes {dimension_semantics = [#tpu.dimension_semantics<parallel>], iteration_bounds = array<i64: 1>, scalar_prefetch = 0 : i64, scratch_operands = 0 : i64, tpu.core_type = #tpu.core_type<tc>, window_params = [{transform_indices = @transform_0, window_bounds = array<i64: 8, 128>}, {pipeline_mode = #tpu.pipeline_mode<synchronous>, transform_indices = @transform_1, window_bounds = array<i64: 1, 128>}, {pipeline_mode = #tpu.pipeline_mode<synchronous>, transform_indices = @transform_2, window_bounds = array<i64: 1, 128>}, {pipeline_mode = #tpu.pipeline_mode<synchronous>, transform_indices = @transform_3, window_bounds = array<i64: 128, 128>}, {transform_indices = @transform_4, window_bounds = array<i64: 8, 128>}]} {
    %c0 = arith.constant 0 : index
    %c0_0 = arith.constant 0 : index
    %0 = vector.load %arg1[%c0, %c0_0] : memref<8x128xf32, #tpu.memory_space<vmem>>, vector<8x128xf32>
    %c0_1 = arith.constant 0 : index
    %c0_2 = arith.constant 0 : index
    %1 = vector.load %arg4[%c0_1, %c0_2] : memref<128x128xf32, #tpu.memory_space<vmem>>, vector<128x128xf32>
    %cst = arith.constant dense<0.000000e+00> : vector<8x128xf32>
    %2 = tpu.matmul %0, %1, %cst {dimension_numbers = #tpu.dot_dimension_numbers<[1], [0], [0], [1], [0, 0, 1, 1], [], []>} : vector<8x128xf32>, vector<128x128xf32>, vector<8x128xf32> -> vector<8x128xf32>
    %cst_3 = arith.constant 3.125000e-02 : f32
    %3 = vector.broadcast %cst_3 : f32 to vector<8x128xf32>
    %4 = arith.mulf %2, %3 : vector<8x128xf32>
    %5 = arith.subf %0, %4 : vector<8x128xf32>
    %6 = arith.mulf %5, %5 : vector<8x128xf32>
    %cst_4 = arith.constant dense<0.000000e+00> : vector<8x128xf32>
    %7 = tpu.matmul %6, %1, %cst_4 {dimension_numbers = #tpu.dot_dimension_numbers<[1], [0], [0], [1], [0, 0, 1, 1], [], []>} : vector<8x128xf32>, vector<128x128xf32>, vector<8x128xf32> -> vector<8x128xf32>
    %cst_5 = arith.constant 3.125000e-02 : f32
    %8 = vector.broadcast %cst_5 : f32 to vector<8x128xf32>
    %9 = arith.mulf %7, %8 : vector<8x128xf32>
    %cst_6 = arith.constant 9.99999996E-13 : f32
    %10 = vector.broadcast %cst_6 : f32 to vector<8x128xf32>
    %11 = arith.addf %9, %10 : vector<8x128xf32>
    %12 = math.rsqrt %11 : vector<8x128xf32>
    %13 = arith.mulf %5, %12 : vector<8x128xf32>
    %c0_7 = arith.constant 0 : index
    %c0_8 = arith.constant 0 : index
    %14 = vector.load %arg2[%c0_7, %c0_8] : memref<1x128xf32, #tpu.memory_space<vmem>>, vector<1x128xf32>
    %15 = vector.broadcast %14 : vector<1x128xf32> to vector<8x128xf32>
    %16 = arith.mulf %15, %13 : vector<8x128xf32>
    %c0_9 = arith.constant 0 : index
    %c0_10 = arith.constant 0 : index
    %17 = vector.load %arg3[%c0_9, %c0_10] : memref<1x128xf32, #tpu.memory_space<vmem>>, vector<1x128xf32>
    %18 = vector.broadcast %17 : vector<1x128xf32> to vector<8x128xf32>
    %19 = arith.addf %16, %18 : vector<8x128xf32>
    %c0_11 = arith.constant 0 : index
    %c0_12 = arith.constant 0 : index
    %20 = vector.load %arg5[%c0_11, %c0_12] : memref<8x128xf32, #tpu.memory_space<vmem>>, vector<8x128xf32>
    tpu.vector_store %arg5[%c0_11, %c0_12], %19 {strides = array<i32>} : memref<8x128xf32, #tpu.memory_space<vmem>>, vector<8x128xf32>,
    return
  }
  func.func @transform_0(%arg0: i32) -> (i32, i32) {
    %c0_i32 = arith.constant 0 : i32
    %c0_i32_0 = arith.constant 0 : i32
    return %arg0, %c0_i32 : i32, i32
  }
  func.func @transform_1(%arg0: i32) -> (i32, i32) {
    %c0_i32 = arith.constant 0 : i32
    %c0_i32_0 = arith.constant 0 : i32
    %c0_i32_1 = arith.constant 0 : i32
    return %c0_i32, %c0_i32_0 : i32, i32
  }
  func.func @transform_2(%arg0: i32) -> (i32, i32) {
    %c0_i32 = arith.constant 0 : i32
    %c0_i32_0 = arith.constant 0 : i32
    %c0_i32_1 = arith.constant 0 : i32
    return %c0_i32, %c0_i32_0 : i32, i32
  }
  func.func @transform_3(%arg0: i32) -> (i32, i32) {
    %c0_i32 = arith.constant 0 : i32
    %c0_i32_0 = arith.constant 0 : i32
    %c0_i32_1 = arith.constant 0 : i32
    return %c0_i32, %c0_i32_0 : i32, i32
  }
  func.func @transform_4(%arg0: i32) -> (i32, i32) {
    %c0_i32 = arith.constant 0 : i32
    %c0_i32_0 = arith.constant 0 : i32
    return %arg0, %c0_i32 : i32, i32
  }
}

</mosaic_0001>

<bundles_post_ra>
// kernel: tpu_custom_call.1
= control target key start
LH: loop header
LB: loop body
LE: loop exit
PB: predicated region body
PF: predicated region fallthrough
CT: control target
= control target key end

     0   :  { %9 = vsyncpa [#allocation3], 0  ;;  %s566_s0 = inlined_call_operand.hbm [shape: f32[4,128], index: 0, kind: input, shape index: {}]   ;;  %s567_s1 = inlined_call_operand.vmem [shape: f32[1,128], index: 1, kind: input, shape index: {}]   ;;  %s568_s2 = inlined_call_operand.vmem [shape: f32[1,128], index: 2, kind: input, shape index: {}]   ;;  %s569_s3 = inlined_call_operand.hbm [shape: f32[128,128], index: 3, kind: input, shape index: {}]   ;;  %s570_s4 = inlined_call_operand.hbm [shape: f32[4,128], index: 4, kind: output, shape index: {}]  }
   0x1   :  { %10 = vsyncpa [#allocation6], 0 }
   0x2   :  { %11 = vsyncpa [#allocation4], 0 }
   0x3   :  { %16 = vsyncadd [#allocation3], 64  ;;  %s483_s15 = smov [#allocation2]   ;;  %s411_s19 = scalar_lea.hbm %s566_s0, 64 }
   0x4   :  { %s17_s16 = sshll.u32 %s483_s15, 4  ;;  %p412_p0 = scmp.ne.s32.totalorder %s566_s0, %s411_s19  ;;  %s18_s16 = int_to_ptr.vmem [resolvable:$true] %s17_s16 }
   0x5   :  { %p415_p1 = scmp.lt.u32.totalorder %s411_s19, %s566_s0 }
   0x7   :  { %p417_p2 = pnand %p415_p1, %p412_p0 }
   0x9   :  { %420 = shalt.err (!%p417_p2)
}
   0xa   :  { %s421_s24 = scalar_lea.vmem %s18_s16, 64  ;;  %s425_s25 = scalar_lea.vmem %s18_s16, 128 }
   0xb   :  { %p422_p3 = scmp.ne.s32.totalorder %s18_s16, %s421_s24  ;;  %p426_p4 = scmp.lt.s32.totalorder %s18_s16, %s18_s16 }
   0xc   :  { %p427_p5 = scmp.lt.s32.totalorder %s425_s25, %s421_s24 }
   0xe   :  { %p428_p6 = por %p427_p5, %p426_p4 }
  0x10   :  { %p429_p7 = pnand %p428_p6, %p422_p3 }
  0x12   :  { %432 = shalt.err (!%p429_p7)
}
  0x13   :  { %s484_s26 = smov 64   ;;  %s485_s27 = smov 4  }
  0x14   :  { %23 = dma.hbm_to_vmem [thread:$0]  %s566_s0, 64, %s18_s16, [#allocation3], %s484_s26, %s484_s26, %s485_s27  }
  0x15   :  { %s486_s30 = smov [#allocation5]   ;;  %s433_s8 = scalar_lea.hbm %s569_s3, 2048 }
  0x16   :  { %s33_s5 = sshll.u32 %s486_s30, 4  ;;  %p434_p8 = scmp.ne.s32.totalorder %s569_s3, %s433_s8  ;;  %s34_s5 = int_to_ptr.vmem [resolvable:$true] %s33_s5 }
  0x17   :  { %p437_p9 = scmp.lt.u32.totalorder %s433_s8, %s569_s3 }
  0x19   :  { %p439_p10 = pnand %p437_p9, %p434_p8 }
  0x1b   :  { %442 = shalt.err (!%p439_p10)
}
  0x1c   :  { %s443_s13 = scalar_lea.vmem %s34_s5, 2048  ;;  %p448_p12 = scmp.lt.s32.totalorder %s34_s5, %s34_s5 }
  0x1d   :  { %p444_p11 = scmp.ne.s32.totalorder %s34_s5, %s443_s13  ;;  %p449_p13 = scmp.lt.s32.totalorder %s443_s13, %s443_s13 }
  0x1f   :  { %p450_p0 = por %p449_p13, %p448_p12 }
  0x21   :  { %p451_p1 = pnand %p450_p0, %p444_p11 }
  0x23   :  { %454 = shalt.err (!%p451_p1)
}
  0x24   :  { %s487_s0 = smov 128   ;;  %s488_s14 = smov 8  }
  0x25   :  { %39 = dma.hbm_to_vmem [thread:$0]  %s569_s3, 2048, %s34_s5, [#allocation6], %s487_s0, %s487_s0, %s488_s14  }
  0x26   :  { %477 = dma.done.wait [#allocation3], 128  }
  0x27   :  { %478 = vsyncadd [#allocation3], 4294967168 }
  0x28   :  { %479 = dma.done.wait [#allocation6], 2048  }
  0x29   :  { %480 = vsyncadd [#allocation6], 4294965248  ;;  %v489_v0 = vmov 0.0|0.0   ;;  %vm490_vm0 = vmmov 0   ;;  %v491_v1 = vmov 0.0   ;;  %v47_v2 = vld [vmem:[#allocation5] sm:$0xff] }
  0x2a   :  { %351 = vmatprep.subr.bf16.mxu0 %v489_v0  ;;  %313 = vmatprep.mubr.msk.f32.mxu0 %vm490_vm0, %v491_v1  ;;  %v48_v3 = vld [vmem:[#allocation5 + $0x8] sm:$0xff]  ;;  %v49_v4 = vld [vmem:[#allocation5 + $0x10] sm:$0xff]  ;;  %v50_v6 = vld [vmem:[#allocation5 + $0x18] sm:$0xff] }
  0x2b   :  { %375 = vmatprep.subr.bf16.mxu1 %v489_v0  ;;  %348 = vmatprep.mubr.msk.f32.mxu1 %vm490_vm0, %v491_v1  ;;  %v352_v5 = vpack.c.bf16 %v48_v3, %v47_v2  ;;  %v355_v7 = vpack.c.bf16 %v50_v6, %v49_v4  ;;  %v51_v8 = vld [vmem:[#allocation5 + $0x20] sm:$0xff]  ;;  %v52_v9 = vld [vmem:[#allocation5 + $0x28] sm:$0xff]  ;;  %v53_v11 = vld [vmem:[#allocation5 + $0x30] sm:$0xff] }
  0x2c   :  { %v358_v10 = vpack.c.bf16 %v52_v9, %v51_v8  ;;  %v54_v12 = vld [vmem:[#allocation5 + $0x38] sm:$0xff]  ;;  %v55_v14 = vld [vmem:[#allocation5 + $0x40] sm:$0xff]  ;;  %v56_v15 = vld [vmem:[#allocation5 + $0x48] sm:$0xff] }
  0x2d   :  { %353 = vmatpush3.bf16.msra.mxu0 %v352_v5  ;;  %377 = vmatpush3.bf16.msra.mxu1 %v352_v5  ;;  %v361_v13 = vpack.c.bf16 %v54_v12, %v53_v11  ;;  %v364_v16 = vpack.c.bf16 %v56_v15, %v55_v14  ;;  %v57_v17 = vld [vmem:[#allocation5 + $0x50] sm:$0xff]  ;;  %v58_v18 = vld [vmem:[#allocation5 + $0x58] sm:$0xff]  ;;  %v59_v20 = vld [vmem:[#allocation5 + $0x60] sm:$0xff] }
  0x2e   :  { %354 = vmatprep.subr.bf16.mxu0 %v489_v0  ;;  %378 = vmatprep.subr.bf16.mxu1 %v489_v0  ;;  %v367_v19 = vpack.c.bf16 %v58_v18, %v57_v17  ;;  %v60_v21 = vld [vmem:[#allocation5 + $0x68] sm:$0xff]  ;;  %v61_v23 = vld [vmem:[#allocation5 + $0x70] sm:$0xff]  ;;  %v62_v24 = vld [vmem:[#allocation5 + $0x78] sm:$0xff] }
  0x2f   :  { %v370_v22 = vpack.c.bf16 %v60_v21, %v59_v20  ;;  %v373_v25 = vpack.c.bf16 %v62_v24, %v61_v23  ;;  %v46_v26 = vld [vmem:[#allocation2] sm:$0xff] }
  0x30   :  { %v245_v37 = vld [vmem:[%s567_s1] ss:$0 sm:$0xff] }
  0x31   :  { %356 = vmatpush3.bf16.msra.mxu0 %v355_v7  ;;  %380 = vmatpush3.bf16.msra.mxu1 %v355_v7  ;;  %v246_v39 = vld [vmem:[%s568_s2] ss:$0 sm:$0xff] }
  0x32   :  { %357 = vmatprep.subr.bf16.mxu0 %v489_v0  ;;  %381 = vmatprep.subr.bf16.mxu1 %v489_v0 }
  0x35   :  { %359 = vmatpush3.bf16.msra.mxu0 %v358_v10  ;;  %383 = vmatpush3.bf16.msra.mxu1 %v358_v10 }
  0x36   :  { %360 = vmatprep.subr.bf16.mxu0 %v489_v0  ;;  %384 = vmatprep.subr.bf16.mxu1 %v489_v0 }
  0x39   :  { %362 = vmatpush3.bf16.msra.mxu0 %v361_v13  ;;  %386 = vmatpush3.bf16.msra.mxu1 %v361_v13 }
  0x3a   :  { %363 = vmatprep.subr.bf16.mxu0 %v489_v0  ;;  %387 = vmatprep.subr.bf16.mxu1 %v489_v0 }
  0x3d   :  { %365 = vmatpush3.bf16.msra.mxu0 %v364_v16  ;;  %389 = vmatpush3.bf16.msra.mxu1 %v364_v16 }
  0x3e   :  { %366 = vmatprep.subr.bf16.mxu0 %v489_v0  ;;  %390 = vmatprep.subr.bf16.mxu1 %v489_v0 }
  0x41   :  { %368 = vmatpush3.bf16.msra.mxu0 %v367_v19  ;;  %392 = vmatpush3.bf16.msra.mxu1 %v367_v19 }
  0x42   :  { %369 = vmatprep.subr.bf16.mxu0 %v489_v0  ;;  %393 = vmatprep.subr.bf16.mxu1 %v489_v0 }
  0x45   :  { %371 = vmatpush3.bf16.msra.mxu0 %v370_v22  ;;  %395 = vmatpush3.bf16.msra.mxu1 %v370_v22 }
  0x46   :  { %372 = vmatprep.subr.bf16.mxu0 %v489_v0  ;;  %396 = vmatprep.subr.bf16.mxu1 %v489_v0 }
  0x49   :  { %374 = vmatpush3.bf16.msra.mxu0 %v373_v25  ;;  %398 = vmatpush3.bf16.msra.mxu1 %v373_v25 }
  0x4c   :  { %314 = vmatmul.mubr.f32.vlgmr.msra.gmra.mrb[0].mxu0 %v46_v26 }
 0x11f   :  { %v129_v27 = vpop.f32.mrb[0].mxu0 }
 0x120   :  { %v133_v28 = vmul.f32 0.03125, %v129_v27  ;;  %v315_v29 = vpop.f32.mrb[1].mxu0 }
 0x122   :  { %v134_v30 = vsub.f32 %v46_v26, %v133_v28 }
 0x124   :  { %v135_v31 = vmul.f32 %v134_v30, %v134_v30 }
 0x126   :  { %349 = vmatmul.mubr.f32.vlgmr.msra.gmra.mrb[0].mxu1 %v135_v31 }
 0x1f9   :  { %v202_v32 = vpop.f32.mrb[0].mxu1 }
 0x1fa   :  { %v206_v33 = vmul.f32 0.03125, %v202_v32  ;;  %v350_v34 = vpop.f32.mrb[1].mxu1 }
 0x1fc   :  { %v207_v35 = vadd.f32 1e-12, %v206_v33 }
 0x1fe   :  { %409 = vrsqrt.f32 %v207_v35 }
 0x208   :  { %v410_v36 = vpop.eup %409 }
 0x209   :  { %v209_v38 = vmul.f32 %v410_v36, %v134_v30 }
 0x20b   :  { %v217_v40 = vmul.f32 %v245_v37, %v209_v38 }
 0x20d   :  { %v225_v41 = vadd.f32 %v246_v39, %v217_v40 }
 0x20f   :  { %226 = vst [vmem:[#allocation7] sm:$0xff] %v225_v41 }
 0x210   :  { %231 = vsyncadd [#allocation4], 64  ;;  %s492_s20 = smov [#allocation7]  }
 0x211   :  { %s232_s21 = sshll.u32 %s492_s20, 4  ;;  %s233_s21 = int_to_ptr.vmem [resolvable:$true] %s232_s21 }
 0x212   :  { %s455_s22 = scalar_lea.vmem %s233_s21, 64  ;;  %s459_s23 = scalar_lea.vmem %s233_s21, 128 }
 0x213   :  { %p456_p2 = scmp.ne.s32.totalorder %s233_s21, %s455_s22  ;;  %p460_p3 = scmp.lt.s32.totalorder %s233_s21, %s233_s21 }
 0x214   :  { %p461_p4 = scmp.lt.s32.totalorder %s459_s23, %s455_s22 }
 0x216   :  { %p462_p5 = por %p461_p4, %p460_p3 }
 0x218   :  { %p463_p6 = pnand %p462_p5, %p456_p2 }
 0x21a   :  { %466 = shalt.err (!%p463_p6)
}
 0x21b   :  { %s467_s25 = scalar_lea.hbm %s570_s4, 64 }
 0x21c   :  { %p468_p7 = scmp.ne.s32.totalorder %s570_s4, %s467_s25  ;;  %p471_p8 = scmp.lt.u32.totalorder %s467_s25, %s570_s4 }
 0x21e   :  { %p473_p9 = pnand %p471_p8, %p468_p7 }
 0x220   :  { %476 = shalt.err (!%p473_p9)
}
 0x221   :  { %238 = dma.vmem_to_hbm [thread:$0]  %s233_s21, 64, %s570_s4, [#allocation4], %s484_s26, %s484_s26, %s485_s27  }
 0x222   :  { %481 = dma.done.wait [#allocation4], 128  }
 0x223   :  { %482 = vsyncadd [#allocation4], 4294967168 }
 0x224   :  { %242 = vsyncpa [#allocation3], 1 }
 0x225   :  { %243 = vsyncpa [#allocation6], 1 }
 0x226   :  { %244 = vsyncpa [#allocation4], 1 }

</bundles_post_ra>
